<compile_context>
chip_gen: v7x
topology: tpu7x:2x2x1
jax: 0.10.0
libtpu: 0.0.40
codegen_flags: <defaults>
</compile_context>

<pallas_src>
import jax
import jax.numpy as jnp
from jax.experimental import pallas as pl
from jax.experimental.pallas import tpu as pltpu


def _round_up(x: int, m: int) -> int:
    return (x + m - 1) // m * m


def _ceil_div(a: int, b: int) -> int:
    return -(-a // b)


def _vmem_capacity_bytes() -> int:
    """Physical VMEM of the attached TPU; conservative default if unknown."""
    default = 64 * 1024 * 1024  # safe on every generation (v7x has 64 MiB/TC)
    try:
        info = pltpu.get_tpu_info()
        return int(getattr(info, "vmem_capacity_bytes", default))
    except Exception:
        return default


def _choose_tiles(B: int, D: int, itemsize: int):
    """Generation-aware tile + VMEM budget selection."""
    vmem_cap = _vmem_capacity_bytes()
    vmem_limit = min(vmem_cap // 2, 64 * 1024 * 1024)      # 32 MiB v7x, 64 MiB v5e/v6e
    max_tile_bytes = min(vmem_limit // 4, 16 * 1024 * 1024)  # 8 MiB v7x, 16 MiB v5e/v6e

    # Sublane packing: 8 rows (f32), 16 (bf16/f16), 32 (int8/fp8).
    pack = max(8, 32 // max(itemsize, 1))
    tb_cap = (256 // pack) * pack                            # = 256 for all packs
    TB = B if B <= tb_cap else tb_cap

    d128 = _round_up(D, 128)
    td_cap_cols = max(128, (max_tile_bytes // max(TB * itemsize, 1)) // 128 * 128)
    # 16384-column cap bounds the in-kernel chunked-accumulation unroll; for
    # realistic batch sizes the byte budget binds first anyway.
    TD = max(128, min(d128, td_cap_cols, 16384))
    return TB, TD, vmem_limit


def _make_kernel(TB: int, TD: int, D: int, nDs: int, needs_mask: bool, acc_w: int):
    n_chunks = TD // acc_w

    def kernel(g_ref, out_ref, acc_ref):
        # g_ref:   (TB, TD) input tile (native dtype)
        # out_ref: (TB, 1)  per-row partial sum-of-squares (f32), resident over k
        # acc_ref: (TB, acc_w) f32 lane-wide accumulator
        s = pl.program_id(1)   # D-split index (megacore), parallel
        k = pl.program_id(2)   # reduction step within the split, arbitrary (last)

        @pl.when(k == 0)
        def _():
            acc_ref[...] = jnp.zeros_like(acc_ref)

        g = g_ref[...].astype(jnp.float32)
        if needs_mask:
            j = s * nDs + k                      # global D block index (traced)
            valid = D - j * TD                   # columns of this tile inside D
            col = jax.lax.broadcasted_iota(jnp.int32, (TB, TD), 1)
            g = jnp.where(col < valid, g, 0.0)   # zero ragged tail / phantom tile

        gsq = g * g
        # Lane-wide accumulation: pure VALU adds over static column chunks.
        contrib = gsq[:, 0:acc_w]
        for c in range(1, n_chunks):
            contrib = contrib + gsq[:, c * acc_w:(c + 1) * acc_w]
        acc_ref[...] += contrib

        @pl.when(k == nDs - 1)
        def _():
            # Single cross-lane (XLU) reduce per row-block, off the steady state.
            out_ref[...] = jnp.sum(acc_ref[...], axis=1, keepdims=True)

    return kernel


def gp_loss_from_gradients(gradients_flat: jax.Array) -> jax.Array:
    """gradients_flat: (B, D) float array -> scalar f32 loss."""
    B, D = gradients_flat.shape
    itemsize = jnp.dtype(gradients_flat.dtype).itemsize

    TB, TD, vmem_limit = _choose_tiles(B, D, itemsize)
    nB = _ceil_div(B, TB)
    nD_total = _ceil_div(D, TD)

    # v7x megacore: if the batch axis yields a single parallel block, split the
    # D reduction into two independent halves so both TensorCores stream half
    # the bytes each; partial sums are combined in the wrapper.
    if nB == 1 and nD_total >= 2:
        S = 2
        nDs = _ceil_div(nD_total, 2)
    else:
        S = 1
        nDs = nD_total

    phantom = (S * nDs != nD_total)              # odd tile count -> one dummy step
    needs_mask = (D % TD != 0) or phantom

    # Lane-wide accumulator width (must divide TD; bounds the unrolled loop).
    acc_w = 128
    for w_ in (2048, 1024, 512, 256):
        if TD % w_ == 0:
            acc_w = w_
            break

    if phantom:
        last_blk = nD_total - 1
        in_index = lambda i, s, k: (i, jnp.minimum(s * nDs + k, last_blk))
    else:
        in_index = lambda i, s, k: (i, s * nDs + k)

    kernel = _make_kernel(TB, TD, D, nDs, needs_mask, acc_w)

    cost = pl.CostEstimate(
        flops=2 * B * D + B * (S + 2),
        transcendentals=0,
        bytes_accessed=B * D * itemsize + S * B * 4,
    )

    partials = pl.pallas_call(
        kernel,
        out_shape=jax.ShapeDtypeStruct((S, B, 1), jnp.float32),
        grid_spec=pltpu.PrefetchScalarGridSpec(
            num_scalar_prefetch=0,
            grid=(nB, S, nDs),                                   # reduction axis last
            in_specs=[pl.BlockSpec((TB, TD), in_index)],
            out_specs=pl.BlockSpec((None, TB, 1), lambda i, s, k: (s, i, 0)),
            scratch_shapes=[pltpu.VMEM((TB, acc_w), jnp.float32)],
        ),
        compiler_params=pltpu.CompilerParams(
            dimension_semantics=("parallel", "parallel", "arbitrary"),
            vmem_limit_bytes=vmem_limit,
        ),
        cost_estimate=cost,
    )(gradients_flat)

    # Tiny per-row finalize (B elements) in the wrapper: sum splits, sqrt,
    # penalty, batch mean.
    ss = jnp.sum(partials[:, :, 0], axis=0)                      # (B,)
    return jnp.mean((jnp.sqrt(ss) - 1.0) ** 2)


def gp_loss(critic_fn, x: jax.Array) -> jax.Array:
    """
    Full GPLoss.forward equivalent.
      critic_fn: x -> y   (the 'interpolate logits' producer; needed because
                           JAX computes gradients from functions, not tensors)
      x:         (B, C, H, W) 'interpolate images'
    """
    y, vjp_fn = jax.vjp(critic_fn, x)
    fake = jnp.ones_like(y)                       # grad_outputs = ones(y.size())
    (gradients,) = vjp_fn(fake)                   # d(fake-weighted sum of y)/dx
    B = gradients.shape[0]
    gradients_flat = gradients.reshape(B, -1)     # .view(B, -1); keep native dtype
    return gp_loss_from_gradients(gradients_flat)


if __name__ == "__main__":
    key = jax.random.PRNGKey(0)
    kx, kw = jax.random.split(key)

    # Small shapes consistent with the module's image-style input.
    B, C, H, W = 2, 4, 16, 16
    D = C * H * W

    x = jax.random.normal(kx, (B, C, H, W), dtype=jnp.float32)

    # Deterministic synthetic "critic" (GPLoss itself has no parameters; a
    # differentiable y = f(x) is required to take gradients w.r.t. x).
    W_crit = jax.random.normal(kw, (D, 1), dtype=jnp.float32) * 0.05

    def critic_fn(x_in):
        flat = x_in.reshape(x_in.shape[0], -1)          # (B, D)
        return jnp.tanh(flat @ W_crit)                  # (B, 1) logits

    loss = gp_loss(critic_fn, x)
    jax.block_until_ready(loss)

    # Pure-JAX reference check of the kernel's reduction path.
    y_ref, vjp_fn = jax.vjp(critic_fn, x)
    (g_ref,) = vjp_fn(jnp.ones_like(y_ref))
    g_flat = g_ref.reshape(B, -1)
    loss_ref = jnp.mean((jnp.linalg.norm(g_flat, axis=1) - 1.0) ** 2)

    assert jnp.allclose(loss, loss_ref, rtol=1e-5, atol=1e-6), (loss, loss_ref)
    print("KERNEL_OK")
</pallas_src>

<mosaic_0001>
module attributes {stable_mosaic.version = 11 : i64} {
  func.func @kernel(%arg0: i32, %arg1: i32, %arg2: i32, %arg3: memref<2x1024xf32, #tpu.memory_space<vmem>>, %arg4: memref<1x2x1xf32, #tpu.memory_space<vmem>>, %arg5: memref<2x1024xf32, #tpu.memory_space<vmem>>) attributes {dimension_semantics = [#tpu.dimension_semantics<parallel>, #tpu.dimension_semantics<parallel>, #tpu.dimension_semantics<arbitrary>], iteration_bounds = array<i64: 1, 1, 1>, scalar_prefetch = 0 : i64, scratch_operands = 1 : i64, tpu.core_type = #tpu.core_type<tc>, window_params = [{transform_indices = @transform_0, window_bounds = array<i64: 2, 1024>}, {transform_indices = @transform_1, window_bounds = array<i64: 1, 2, 1>}]} {
    %c0_i32 = arith.constant 0 : i32
    %0 = arith.cmpi eq, %arg2, %c0_i32 : i32
    %1 = arith.extui %0 : i1 to i32
    %c0_i32_0 = arith.constant 0 : i32
    %2 = arith.cmpi ne, %1, %c0_i32_0 : i32
    scf.if %2 {
      %cst = arith.constant 0.000000e+00 : f32
      %11 = vector.broadcast %cst : f32 to vector<2x1024xf32>
      %c0_8 = arith.constant 0 : index
      %c0_9 = arith.constant 0 : index
      %12 = vector.load %arg5[%c0_8, %c0_9] : memref<2x1024xf32, #tpu.memory_space<vmem>>, vector<2x1024xf32>
      tpu.vector_store %arg5[%c0_8, %c0_9], %11 {strides = array<i32>} : memref<2x1024xf32, #tpu.memory_space<vmem>>, vector<2x1024xf32>,
    } else {
    }
    %c0 = arith.constant 0 : index
    %c0_1 = arith.constant 0 : index
    %3 = vector.load %arg3[%c0, %c0_1] : memref<2x1024xf32, #tpu.memory_space<vmem>>, vector<2x1024xf32>
    %4 = arith.mulf %3, %3 : vector<2x1024xf32>
    %c0_2 = arith.constant 0 : index
    %c0_3 = arith.constant 0 : index
    %5 = vector.load %arg5[%c0_2, %c0_3] : memref<2x1024xf32, #tpu.memory_space<vmem>>, vector<2x1024xf32>
    %6 = arith.addf %5, %4 : vector<2x1024xf32>
    %c0_4 = arith.constant 0 : index
    %c0_5 = arith.constant 0 : index
    %7 = vector.load %arg5[%c0_4, %c0_5] : memref<2x1024xf32, #tpu.memory_space<vmem>>, vector<2x1024xf32>
    tpu.vector_store %arg5[%c0_4, %c0_5], %6 {strides = array<i32>} : memref<2x1024xf32, #tpu.memory_space<vmem>>, vector<2x1024xf32>,
    %c0_i32_6 = arith.constant 0 : i32
    %8 = arith.cmpi eq, %arg2, %c0_i32_6 : i32
    %9 = arith.extui %8 : i1 to i32
    %c0_i32_7 = arith.constant 0 : i32
    %10 = arith.cmpi ne, %9, %c0_i32_7 : i32
    scf.if %10 {
      %c0_8 = arith.constant 0 : index
      %c0_9 = arith.constant 0 : index
      %11 = vector.load %arg5[%c0_8, %c0_9] : memref<2x1024xf32, #tpu.memory_space<vmem>>, vector<2x1024xf32>
      %cst = arith.constant dense<0.000000e+00> : vector<2xf32>
      %12 = vector.multi_reduction <add>, %11, %cst [1] : vector<2x1024xf32> to vector<2xf32>
      %13 = vector.shape_cast %12 : vector<2xf32> to vector<2x1xf32>
      %c0_10 = arith.constant 0 : index
      %c0_11 = arith.constant 0 : index
      %c0_12 = arith.constant 0 : index
      %14 = vector.load %arg4[%c0_10, %c0_11, %c0_12] : memref<1x2x1xf32, #tpu.memory_space<vmem>>, vector<1x2x1xf32>
      %15 = vector.shape_cast %14 : vector<1x2x1xf32> to vector<2x1xf32>
      %16 = vector.shape_cast %13 : vector<2x1xf32> to vector<1x2x1xf32>
      tpu.vector_store %arg4[%c0_10, %c0_11, %c0_12], %16 {strides = array<i32>} : memref<1x2x1xf32, #tpu.memory_space<vmem>>, vector<1x2x1xf32>,
    } else {
    }
    return
  }
  func.func @transform_0(%arg0: i32, %arg1: i32, %arg2: i32) -> (i32, i32) {
    %c1_i32 = arith.constant 1 : i32
    %0 = arith.muli %arg1, %c1_i32 : i32
    %1 = arith.addi %0, %arg2 : i32
    %c0_i32 = arith.constant 0 : i32
    return %arg0, %1 : i32, i32
  }
  func.func @transform_1(%arg0: i32, %arg1: i32, %arg2: i32) -> (i32, i32, i32) {
    %c0_i32 = arith.constant 0 : i32
    %c0_i32_0 = arith.constant 0 : i32
    return %arg1, %arg0, %c0_i32 : i32, i32, i32
  }
}

</mosaic_0001>

<bundles_post_ra>
// kernel: tpu_custom_call.1
= control target key start
LH: loop header
LB: loop body
LE: loop exit
PB: predicated region body
PF: predicated region fallthrough
CT: control target
= control target key end

     0   :  { %6 = vsyncpa [#allocation4], 0  ;;  %s142_s6 = smov [#allocation3]   ;;  %s177_s0 = inlined_call_operand.hbm [shape: f32[2,1024], index: 0, kind: input, shape index: {}]   ;;  %s178_s1 = inlined_call_operand.vmem [shape: f32[1,2,1], index: 1, kind: output, shape index: {}]  }
   0x1   :  { %s17_s7 = sshll.u32 %s142_s6, 4  ;;  %s118_s10 = scalar_lea.hbm %s177_s0, 256  ;;  %s18_s7 = int_to_ptr.vmem [resolvable:$true] %s17_s7 }
   0x2   :  { %p119_p0 = scmp.ne.s32.totalorder %s177_s0, %s118_s10  ;;  %p122_p1 = scmp.lt.u32.totalorder %s118_s10, %s177_s0 }
   0x4   :  { %p124_p2 = pnand %p122_p1, %p119_p0 }
   0x6   :  { %127 = shalt.err (!%p124_p2)
}
   0x7   :  { %s128_s15 = scalar_lea.vmem %s18_s7, 256  ;;  %p133_p4 = scmp.lt.s32.totalorder %s18_s7, %s18_s7 }
   0x8   :  { %p129_p3 = scmp.ne.s32.totalorder %s18_s7, %s128_s15  ;;  %p134_p5 = scmp.lt.s32.totalorder %s128_s15, %s128_s15 }
   0xa   :  { %p135_p6 = por %p134_p5, %p133_p4 }
   0xc   :  { %p136_p7 = pnand %p135_p6, %p129_p3 }
   0xe   :  { %139 = shalt.err (!%p136_p7)
}
   0xf   :  { %20 = dma.hbm_to_vmem [thread:$0]  %s177_s0, 256, %s18_s7, [#allocation4]  }
  0x10   :  { %140 = dma.done.wait [#allocation4], 256  }
  0x11   :  { %141 = vsyncadd [#allocation4], 4294967040  ;;  %v53_v0 = vlaneseq  ;;  %v143_v1 = vmov 1983009808   ;;  %v32_v6 = vld [vmem:[#allocation3] sm:$0xff]  ;;  %v33_v7 = vld [vmem:[#allocation3 + $0x8] sm:$0xff] }
  0x12   :  { %v51_v2 = vunpack.c.l.s4 %v143_v1  ;;  %v34_v8 = vmul.f32 %v32_v6, %v32_v6  ;;  %v35_v9 = vmul.f32 %v33_v7, %v33_v7  ;;  %vm91_vm0 = vcmask 1041408  }
  0x13   :  { %v54_v3 = vshrl.u32 %v53_v0, 7  ;;  %vm109_vm1 = vcmask 1024  }
  0x14   :  { %v52_v4 = vunpack.c.0.s8 %v51_v2  ;;  %v49_v10 = vcombine.high %v34_v8, %v34_v8  ;;  %v66_v14 = vcombine.high %v35_v9, %v35_v9 }
  0x16   :  { %v55_v5 = vsub.s32 %v52_v4, %v54_v3 }
  0x18   :  { %v56_v11 = vrot.slane %v34_v8, %v55_v5  ;;  %v63_v12 = vrot.slane %v49_v10, %v55_v5  ;;  %v73_v15 = vrot.slane %v35_v9, %v55_v5  ;;  %v80_v21 = vrot.slane %v66_v14, %v55_v5 }
  0x1a   :  { %v64_v13 = vcombine.high %v56_v11, %v56_v11  ;;  %v92_v16 = vsel %vm91_vm0, %v56_v11, 0.0  ;;  %v65_v17 = vcombine.high %v63_v12, %v63_v12  ;;  %v95_v19 = vsel %vm91_vm0, %v63_v12, 0.0 }
  0x1b   :  { %v81_v22 = vcombine.high %v73_v15, %v73_v15  ;;  %v99_v25 = vsel %vm91_vm0, %v73_v15, 0.0  ;;  %v82_v27 = vcombine.high %v80_v21, %v80_v21  ;;  %v103_v30 = vsel %vm91_vm0, %v80_v21, 0.0 }
  0x1c   :  { %v93_v18 = vsel %vm91_vm0, %v64_v13, 0.0  ;;  %v97_v23 = vsel %vm91_vm0, %v65_v17, 0.0 }
  0x1d   :  { %v94_v20 = vadd.f32 %v93_v18, %v92_v16  ;;  %v101_v28 = vsel %vm91_vm0, %v81_v22, 0.0  ;;  %v105_v32 = vsel %vm91_vm0, %v82_v27, 0.0 }
  0x1f   :  { %v96_v24 = vadd.f32 %v95_v19, %v94_v20 }
  0x21   :  { %v98_v26 = vadd.f32 %v97_v23, %v96_v24 }
  0x23   :  { %v100_v29 = vadd.f32 %v99_v25, %v98_v26 }
  0x25   :  { %v102_v31 = vadd.f32 %v101_v28, %v100_v29 }
  0x27   :  { %v104_v33 = vadd.f32 %v103_v30, %v102_v31 }
  0x29   :  { %v106_v34 = vadd.f32 %v105_v32, %v104_v33 }
  0x2b   :  { %107 = vadd.xlane.f32.xlu0 %v106_v34 }
  0xb8   :  { %v108_v35 = vpop.xlane.xlu0 %107 }
  0xb9   :  { %110 = vst.msk [vmem:[%s178_s1] sm:$0x3] %vm109_vm1, %v108_v35 }
  0xba   :  { %115 = vsyncpa [#allocation4], 1 }

</bundles_post_ra>
